<compile_context>
chip_gen: v5e
topology: v5e:2x2
jax: 0.10.0
libtpu: 0.0.40
codegen_flags: <defaults>
</compile_context>

<pallas_src>
import math

import numpy as np
import jax
import jax.numpy as jnp
from jax.experimental import pallas as pl
from jax.experimental.pallas import tpu as pltpu


def get_rotary_matrix(context_window, emb_dim):
    """Dense block-diagonal RoPE matrices (S, D, D) -- used only by the pure-JAX reference."""
    R = np.zeros((context_window, emb_dim, emb_dim), dtype=np.float32)
    for pos in range(context_window):
        for i in range(emb_dim // 2):
            theta = 10000.0 ** (-2.0 * (i - 1) / emb_dim)   # quirky schedule kept from the module
            m_theta = pos * theta
            R[pos, 2 * i, 2 * i] = math.cos(m_theta)
            R[pos, 2 * i, 2 * i + 1] = -math.sin(m_theta)
            R[pos, 2 * i + 1, 2 * i] = math.sin(m_theta)
            R[pos, 2 * i + 1, 2 * i + 1] = math.cos(m_theta)
    return jnp.asarray(R)


def get_rope_tables(context_window, emb_dim):
    """cos/sin tables (S, D) equivalent to the dense R, with the pair signs folded into sin.

    q_rot = q * cos + swap_pairs(q) * sin,  where swap_pairs exchanges columns (2i, 2i+1).
    """
    cos_t = np.zeros((context_window, emb_dim), dtype=np.float32)
    sin_t = np.zeros((context_window, emb_dim), dtype=np.float32)
    for pos in range(context_window):
        for i in range(emb_dim // 2):
            theta = 10000.0 ** (-2.0 * (i - 1) / emb_dim)
            m_theta = pos * theta
            c, s = math.cos(m_theta), math.sin(m_theta)
            cos_t[pos, 2 * i] = c
            cos_t[pos, 2 * i + 1] = c
            sin_t[pos, 2 * i] = -s
            sin_t[pos, 2 * i + 1] = s
    return jnp.asarray(cos_t), jnp.asarray(sin_t)


def _mha_kernel(x_ref, wqk_ref, bqk_ref, wv_ref, bv_ref, cos_ref, sin_ref,
                wo_ref, bo_ref, out_ref):
    g = pl.program_id(1)
    _, S, D = x_ref.shape

    @pl.when(g == 0)
    def _():
        # Output block is resident across the group (reduction) axis: init with the bias.
        out_ref[0] = jnp.broadcast_to(bo_ref[0], (S, D))

    xv = x_ref[0]                      # (S, D)
    cos = cos_ref[...]                 # (S, D)
    sin = sin_ref[...]                 # (S, D), pair signs pre-folded

    # One fused MXU matmul per group: columns = [q*scale, swap(q)*scale, k, swap(k)].
    qk = jnp.dot(xv, wqk_ref[0], preferred_element_type=jnp.float32) + bqk_ref[0]   # (S, 4D)
    q = qk[:, 0:D]
    q_sw = qk[:, D:2 * D]
    k = qk[:, 2 * D:3 * D]
    k_sw = qk[:, 3 * D:4 * D]

    # All gq_ratio V projections of the group in one wide matmul: (S, gq_ratio*D).
    v_cat = jnp.dot(xv, wv_ref[0], preferred_element_type=jnp.float32) + bv_ref[0]

    # RoPE as elementwise VPU work (1/sqrt(D) already folded into the q columns).
    q_rot = q * cos + q_sw * sin
    k_rot = k * cos + k_sw * sin

    # scores[i, j] = <q_rot[i], k_rot[j]> -- trailing-dim contraction, no transpose.
    # Shared by every head in the group (computed once).
    scores = jax.lax.dot_general(q_rot, k_rot, (((1,), (1,)), ((), ())),
                                 preferred_element_type=jnp.float32)                # (S, S)

    rows = jax.lax.broadcasted_iota(jnp.int32, (S, S), 0)
    cols = jax.lax.broadcasted_iota(jnp.int32, (S, S), 1)
    scores = jnp.where(rows >= cols, scores, -jnp.inf)

    m = jnp.max(scores, axis=-1, keepdims=True)
    p = jnp.exp(scores - m)
    inv_l = pl.reciprocal(jnp.sum(p, axis=-1, keepdims=True), approx=False)
    p = p * inv_l
    # TODO(synk): attention dropout_p=0.2 applies only in train mode; eval semantics here.

    # One wide matmul gives all heads of the group: (S, gq_ratio*D).
    head_out_cat = jnp.dot(p, v_cat, preferred_element_type=jnp.float32)

    # Output projection for the whole group: head_out_cat @ Wo_group, Wo_group = stacked
    # pre-transposed per-head slices (gq_ratio*D, D).  Accumulate into the resident block.
    out_ref[0] = out_ref[0] + jnp.dot(head_out_cat, wo_ref[0],
                                      preferred_element_type=jnp.float32)
    # TODO(synk): trailing nn.Dropout(0.2) is a no-op in eval mode; not applied.


def rope_mha_forward(x, packed, cos_tab, sin_tab):
    B, S, D = x.shape
    G = packed["wqk"].shape[0]
    D4 = packed["wqk"].shape[-1]       # 4*D
    Dg = packed["wv"].shape[-1]        # gq_ratio*D

    return pl.pallas_call(
        _mha_kernel,
        out_shape=jax.ShapeDtypeStruct((B, S, D), jnp.float32),
        grid_spec=pltpu.PrefetchScalarGridSpec(
            num_scalar_prefetch=0,
            grid=(B, G),
            in_specs=[
                pl.BlockSpec((1, S, D), lambda b, g: (b, 0, 0)),     # x
                pl.BlockSpec((1, D, D4), lambda b, g: (g, 0, 0)),    # fused W_qk per group
                pl.BlockSpec((1, 1, D4), lambda b, g: (g, 0, 0)),    # fused b_qk per group
                pl.BlockSpec((1, D, Dg), lambda b, g: (g, 0, 0)),    # concat W_v per group (in, gq*out)
                pl.BlockSpec((1, 1, Dg), lambda b, g: (g, 0, 0)),    # concat b_v per group
                pl.BlockSpec((S, D), lambda b, g: (0, 0)),           # cos table
                pl.BlockSpec((S, D), lambda b, g: (0, 0)),           # sin table
                pl.BlockSpec((1, Dg, D), lambda b, g: (g, 0, 0)),    # stacked W_o slices per group
                pl.BlockSpec((1, 1, D), lambda b, g: (0, 0, 0)),     # b_o
            ],
            out_specs=pl.BlockSpec((1, S, D), lambda b, g: (b, 0, 0)),
        ),
        compiler_params=pltpu.CompilerParams(
            dimension_semantics=("parallel", "arbitrary")),
    )(x, packed["wqk"], packed["bqk"], packed["wv"], packed["bv"],
      cos_tab[:S], sin_tab[:S], packed["wo"], packed["bo"])


def init_params(key, emb_dim, n_heads, gq_ratio):
    """nn.Linear-style init, kept in raw PyTorch layout (weights are (out, in))."""
    D, H = emb_dim, n_heads
    assert H % gq_ratio == 0, "n_heads must be a multiple of gq_ratio"
    G = H // gq_ratio
    keys = jax.random.split(key, 8)
    bound = 1.0 / math.sqrt(D)

    def u(k, shape, b):
        return jax.random.uniform(k, shape, jnp.float32, -b, b)

    wq = u(keys[0], (G, D, D), bound)          # shared per group (grouped-query)
    bq = u(keys[1], (G, D), bound)
    wk = u(keys[2], (G, D, D), bound)
    bk = u(keys[3], (G, D), bound)
    wv = u(keys[4], (H, D, D), bound)
    bv = u(keys[5], (H, D), bound)
    bound_o = 1.0 / math.sqrt(D * H)
    wo = u(keys[6], (D, D * H), bound_o)       # nn.Linear(emb_dim*n_heads, emb_dim).weight
    bo = u(keys[7], (D,), bound_o)
    return dict(wq=wq, bq=bq, wk=wk, bk=bk, wv=wv, bv=bv, wo=wo, bo=bo)


def pack_params(params, gq_ratio):
    """Pre-transpose / fuse / scale weights into the kernel layout (one-time, wrapper-side)."""
    wq, bq = params["wq"], params["bq"]        # (G, D, D) out x in, (G, D)
    wk, bk = params["wk"], params["bk"]
    wv, bv = params["wv"], params["bv"]        # (H, D, D), (H, D)
    wo, bo = params["wo"], params["bo"]        # (D, H*D), (D,)
    G, D, _ = wq.shape
    H = wv.shape[0]
    assert H == G * gq_ratio
    scale = 1.0 / math.sqrt(D)

    # Pair-swap permutation [1,0,3,2,...]; folding swap(q)=q[:,perm] into extra weight columns.
    perm = np.arange(D).reshape(D // 2, 2)[:, ::-1].reshape(D)

    wq_t = jnp.swapaxes(wq, 1, 2) * scale      # (G, D_in, D_out), attention scale folded in
    bq_s = bq * scale
    wk_t = jnp.swapaxes(wk, 1, 2)

    wqk = jnp.concatenate([wq_t, wq_t[:, :, perm], wk_t, wk_t[:, :, perm]], axis=2)   # (G, D, 4D)
    bqk = jnp.concatenate([bq_s, bq_s[:, perm], bk, bk[:, perm]], axis=1)[:, None, :]  # (G, 1, 4D)

    # V weights: per-group concatenation along output columns -> (G, D_in, gq_ratio*D).
    wv_t = jnp.swapaxes(wv, 1, 2)                                       # (H, D_in, D_out)
    wv_cat = wv_t.reshape(G, gq_ratio, D, D).transpose(0, 2, 1, 3).reshape(G, D, gq_ratio * D)
    bv_cat = bv.reshape(G, gq_ratio * D)[:, None, :]                    # (G, 1, gq_ratio*D)

    # Output projection: stacked pre-transposed per-head slices -> (G, gq_ratio*D, D_out).
    # wo_t[h] = Wo[:, h*D:(h+1)*D].T
    wo_t = wo.reshape(D, H, D).transpose(1, 2, 0)                        # (H, D_in, D_out)
    wo_grp = wo_t.reshape(G, gq_ratio * D, D)
    bo_r = bo[None, None, :]                                             # (1, 1, D)
    return dict(wqk=wqk, bqk=bqk, wv=wv_cat, bv=bv_cat, wo=wo_grp, bo=bo_r)


def reference_forward(x, params, R, gq_ratio):
    """Pure-JAX reference mirroring the PyTorch module (kv_cache=False, eval mode), dense R."""
    B, S, D = x.shape
    H = params["wv"].shape[0]
    outs = []
    for h in range(H):
        g = h // gq_ratio
        q = x @ params["wq"][g].T + params["bq"][g]
        k = x @ params["wk"][g].T + params["bk"][g]
        v = x @ params["wv"][h].T + params["bv"][h]
        q_rot = jnp.einsum("bsd,sed->bse", q, R[:S])
        k_rot = jnp.einsum("bsd,sed->bse", k, R[:S])
        scores = jnp.einsum("bqd,bkd->bqk", q_rot, k_rot) / math.sqrt(D)
        mask = jnp.tril(jnp.ones((S, S), bool))
        scores = jnp.where(mask, scores, -jnp.inf)
        attn = jax.nn.softmax(scores, axis=-1)
        outs.append(attn @ v)
    cat = jnp.concatenate(outs, axis=-1)
    return cat @ params["wo"].T + params["bo"]


if __name__ == "__main__":
    context_window, emb_dim, n_heads, gq_ratio = 16, 32, 4, 2
    B, S = 2, 8

    key = jax.random.PRNGKey(0)
    kx, kp = jax.random.split(key)
    x = jax.random.normal(kx, (B, S, emb_dim), jnp.float32)
    params = init_params(kp, emb_dim, n_heads, gq_ratio)
    packed = pack_params(params, gq_ratio)
    cos_tab, sin_tab = get_rope_tables(context_window, emb_dim)

    out = rope_mha_forward(x, packed, cos_tab, sin_tab)
    out = jax.block_until_ready(out)

    R = get_rotary_matrix(context_window, emb_dim)
    ref = reference_forward(x, params, R, gq_ratio)
    err = float(jnp.max(jnp.abs(out - ref)))
    assert jnp.allclose(out, ref, rtol=1e-3, atol=1e-3), f"max abs err {err}"
    print("KERNEL_OK")
</pallas_src>

<mosaic_0001>
module attributes {stable_mosaic.version = 11 : i64} {
  func.func @_mha_kernel(%arg0: i32, %arg1: i32, %arg2: memref<1x8x32xf32, #tpu.memory_space<vmem>>, %arg3: memref<1x32x128xf32, #tpu.memory_space<vmem>>, %arg4: memref<1x1x128xf32, #tpu.memory_space<vmem>>, %arg5: memref<1x32x64xf32, #tpu.memory_space<vmem>>, %arg6: memref<1x1x64xf32, #tpu.memory_space<vmem>>, %arg7: memref<8x32xf32, #tpu.memory_space<vmem>>, %arg8: memref<8x32xf32, #tpu.memory_space<vmem>>, %arg9: memref<1x64x32xf32, #tpu.memory_space<vmem>>, %arg10: memref<1x1x32xf32, #tpu.memory_space<vmem>>, %arg11: memref<1x8x32xf32, #tpu.memory_space<vmem>>) attributes {dimension_semantics = [#tpu.dimension_semantics<parallel>, #tpu.dimension_semantics<arbitrary>], iteration_bounds = array<i64: 2, 2>, scalar_prefetch = 0 : i64, scratch_operands = 0 : i64, tpu.core_type = #tpu.core_type<tc>, window_params = [{transform_indices = @transform_0, window_bounds = array<i64: 1, 8, 32>}, {transform_indices = @transform_1, window_bounds = array<i64: 1, 32, 128>}, {transform_indices = @transform_2, window_bounds = array<i64: 1, 1, 128>}, {transform_indices = @transform_3, window_bounds = array<i64: 1, 32, 64>}, {transform_indices = @transform_4, window_bounds = array<i64: 1, 1, 64>}, {pipeline_mode = #tpu.pipeline_mode<synchronous>, transform_indices = @transform_5, window_bounds = array<i64: 8, 32>}, {pipeline_mode = #tpu.pipeline_mode<synchronous>, transform_indices = @transform_6, window_bounds = array<i64: 8, 32>}, {transform_indices = @transform_7, window_bounds = array<i64: 1, 64, 32>}, {pipeline_mode = #tpu.pipeline_mode<synchronous>, transform_indices = @transform_8, window_bounds = array<i64: 1, 1, 32>}, {transform_indices = @transform_9, window_bounds = array<i64: 1, 8, 32>}]} {
    %c0_i32 = arith.constant 0 : i32
    %0 = arith.cmpi eq, %arg1, %c0_i32 : i32
    %1 = arith.extui %0 : i1 to i32
    %c0_i32_0 = arith.constant 0 : i32
    %2 = arith.cmpi ne, %1, %c0_i32_0 : i32
    scf.if %2 {
      %c0_35 = arith.constant 0 : index
      %c0_36 = arith.constant 0 : index
      %c0_37 = arith.constant 0 : index
      %57 = vector.load %arg10[%c0_35, %c0_36, %c0_37] : memref<1x1x32xf32, #tpu.memory_space<vmem>>, vector<1x1x32xf32>
      %58 = vector.shape_cast %57 : vector<1x1x32xf32> to vector<1x32xf32>
      %59 = vector.shape_cast %58 : vector<1x32xf32> to vector<1x32xf32>
      %60 = vector.broadcast %59 : vector<1x32xf32> to vector<8x32xf32>
      %c0_38 = arith.constant 0 : index
      %c0_39 = arith.constant 0 : index
      %c0_40 = arith.constant 0 : index
      %61 = vector.load %arg11[%c0_38, %c0_39, %c0_40] : memref<1x8x32xf32, #tpu.memory_space<vmem>>, vector<1x8x32xf32>
      %62 = vector.shape_cast %61 : vector<1x8x32xf32> to vector<8x32xf32>
      %63 = vector.shape_cast %60 : vector<8x32xf32> to vector<1x8x32xf32>
      tpu.vector_store %arg11[%c0_38, %c0_39, %c0_40], %63 {strides = array<i32>} : memref<1x8x32xf32, #tpu.memory_space<vmem>>, vector<1x8x32xf32>,
    } else {
    }
    %c0 = arith.constant 0 : index
    %c0_1 = arith.constant 0 : index
    %c0_2 = arith.constant 0 : index
    %3 = vector.load %arg2[%c0, %c0_1, %c0_2] : memref<1x8x32xf32, #tpu.memory_space<vmem>>, vector<1x8x32xf32>
    %4 = vector.shape_cast %3 : vector<1x8x32xf32> to vector<8x32xf32>
    %c0_3 = arith.constant 0 : index
    %c0_4 = arith.constant 0 : index
    %5 = vector.load %arg7[%c0_3, %c0_4] : memref<8x32xf32, #tpu.memory_space<vmem>>, vector<8x32xf32>
    %c0_5 = arith.constant 0 : index
    %c0_6 = arith.constant 0 : index
    %6 = vector.load %arg8[%c0_5, %c0_6] : memref<8x32xf32, #tpu.memory_space<vmem>>, vector<8x32xf32>
    %c0_7 = arith.constant 0 : index
    %c0_8 = arith.constant 0 : index
    %c0_9 = arith.constant 0 : index
    %7 = vector.load %arg3[%c0_7, %c0_8, %c0_9] : memref<1x32x128xf32, #tpu.memory_space<vmem>>, vector<1x32x128xf32>
    %8 = vector.shape_cast %7 : vector<1x32x128xf32> to vector<32x128xf32>
    %cst = arith.constant dense<0.000000e+00> : vector<8x128xf32>
    %9 = tpu.matmul %4, %8, %cst {dimension_numbers = #tpu.dot_dimension_numbers<[1], [0], [0], [1], [0, 0, 1, 1], [], []>} : vector<8x32xf32>, vector<32x128xf32>, vector<8x128xf32> -> vector<8x128xf32>
    %c0_10 = arith.constant 0 : index
    %c0_11 = arith.constant 0 : index
    %c0_12 = arith.constant 0 : index
    %10 = vector.load %arg4[%c0_10, %c0_11, %c0_12] : memref<1x1x128xf32, #tpu.memory_space<vmem>>, vector<1x1x128xf32>
    %11 = vector.shape_cast %10 : vector<1x1x128xf32> to vector<1x128xf32>
    %12 = vector.broadcast %11 : vector<1x128xf32> to vector<8x128xf32>
    %13 = arith.addf %9, %12 : vector<8x128xf32>
    %14 = vector.extract_strided_slice %13 {offsets = [0, 0], sizes = [8, 32], strides = [1, 1]} : vector<8x128xf32> to vector<8x32xf32>
    %15 = vector.extract_strided_slice %13 {offsets = [0, 32], sizes = [8, 32], strides = [1, 1]} : vector<8x128xf32> to vector<8x32xf32>
    %16 = vector.extract_strided_slice %13 {offsets = [0, 64], sizes = [8, 32], strides = [1, 1]} : vector<8x128xf32> to vector<8x32xf32>
    %17 = vector.extract_strided_slice %13 {offsets = [0, 96], sizes = [8, 32], strides = [1, 1]} : vector<8x128xf32> to vector<8x32xf32>
    %c0_13 = arith.constant 0 : index
    %c0_14 = arith.constant 0 : index
    %c0_15 = arith.constant 0 : index
    %18 = vector.load %arg5[%c0_13, %c0_14, %c0_15] : memref<1x32x64xf32, #tpu.memory_space<vmem>>, vector<1x32x64xf32>
    %19 = vector.shape_cast %18 : vector<1x32x64xf32> to vector<32x64xf32>
    %cst_16 = arith.constant dense<0.000000e+00> : vector<8x64xf32>
    %20 = tpu.matmul %4, %19, %cst_16 {dimension_numbers = #tpu.dot_dimension_numbers<[1], [0], [0], [1], [0, 0, 1, 1], [], []>} : vector<8x32xf32>, vector<32x64xf32>, vector<8x64xf32> -> vector<8x64xf32>
    %c0_17 = arith.constant 0 : index
    %c0_18 = arith.constant 0 : index
    %c0_19 = arith.constant 0 : index
    %21 = vector.load %arg6[%c0_17, %c0_18, %c0_19] : memref<1x1x64xf32, #tpu.memory_space<vmem>>, vector<1x1x64xf32>
    %22 = vector.shape_cast %21 : vector<1x1x64xf32> to vector<1x64xf32>
    %23 = vector.broadcast %22 : vector<1x64xf32> to vector<8x64xf32>
    %24 = arith.addf %20, %23 : vector<8x64xf32>
    %25 = arith.mulf %14, %5 : vector<8x32xf32>
    %26 = arith.mulf %15, %6 : vector<8x32xf32>
    %27 = arith.addf %25, %26 : vector<8x32xf32>
    %28 = arith.mulf %16, %5 : vector<8x32xf32>
    %29 = arith.mulf %17, %6 : vector<8x32xf32>
    %30 = arith.addf %28, %29 : vector<8x32xf32>
    %cst_20 = arith.constant dense<0.000000e+00> : vector<8x8xf32>
    %31 = tpu.matmul %27, %30, %cst_20 {dimension_numbers = #tpu.dot_dimension_numbers<[1], [1], [0], [0], [0, 0, 1, 0], [], []>} : vector<8x32xf32>, vector<8x32xf32>, vector<8x8xf32> -> vector<8x8xf32>
    %32 = tpu.iota {dimensions = array<i32: 0>} : vector<8x8xi32>
    %33 = tpu.iota {dimensions = array<i32: 1>} : vector<8x8xi32>
    %34 = arith.cmpi sge, %32, %33 : vector<8x8xi32>
    %cst_21 = arith.constant 0xFF800000 : f32
    %35 = vector.broadcast %cst_21 : f32 to vector<8x8xf32>
    %36 = arith.select %34, %31, %35 : vector<8x8xi1>, vector<8x8xf32>
    %cst_22 = arith.constant dense<0xFF800000> : vector<8xf32>
    %37 = vector.multi_reduction <maximumf>, %36, %cst_22 [1] : vector<8x8xf32> to vector<8xf32>
    %38 = vector.shape_cast %37 : vector<8xf32> to vector<8x1xf32>
    %39 = vector.broadcast %38 : vector<8x1xf32> to vector<8x8xf32>
    %40 = arith.subf %36, %39 : vector<8x8xf32>
    %41 = math.exp %40 : vector<8x8xf32>
    %cst_23 = arith.constant dense<0.000000e+00> : vector<8xf32>
    %42 = vector.multi_reduction <add>, %41, %cst_23 [1] : vector<8x8xf32> to vector<8xf32>
    %43 = vector.shape_cast %42 : vector<8xf32> to vector<8x1xf32>
    %44 = tpu.reciprocal %43 : vector<8x1xf32> -> vector<8x1xf32>
    %45 = vector.broadcast %44 : vector<8x1xf32> to vector<8x8xf32>
    %46 = arith.mulf %41, %45 : vector<8x8xf32>
    %cst_24 = arith.constant dense<0.000000e+00> : vector<8x64xf32>
    %47 = tpu.matmul %46, %24, %cst_24 {dimension_numbers = #tpu.dot_dimension_numbers<[1], [0], [0], [1], [0, 0, 1, 1], [], []>} : vector<8x8xf32>, vector<8x64xf32>, vector<8x64xf32> -> vector<8x64xf32>
    %c0_25 = arith.constant 0 : index
    %c0_26 = arith.constant 0 : index
    %c0_27 = arith.constant 0 : index
    %48 = vector.load %arg11[%c0_25, %c0_26, %c0_27] : memref<1x8x32xf32, #tpu.memory_space<vmem>>, vector<1x8x32xf32>
    %49 = vector.shape_cast %48 : vector<1x8x32xf32> to vector<8x32xf32>
    %c0_28 = arith.constant 0 : index
    %c0_29 = arith.constant 0 : index
    %c0_30 = arith.constant 0 : index
    %50 = vector.load %arg9[%c0_28, %c0_29, %c0_30] : memref<1x64x32xf32, #tpu.memory_space<vmem>>, vector<1x64x32xf32>
    %51 = vector.shape_cast %50 : vector<1x64x32xf32> to vector<64x32xf32>
    %cst_31 = arith.constant dense<0.000000e+00> : vector<8x32xf32>
    %52 = tpu.matmul %47, %51, %cst_31 {dimension_numbers = #tpu.dot_dimension_numbers<[1], [0], [0], [1], [0, 0, 1, 1], [], []>} : vector<8x64xf32>, vector<64x32xf32>, vector<8x32xf32> -> vector<8x32xf32>
    %53 = arith.addf %49, %52 : vector<8x32xf32>
    %c0_32 = arith.constant 0 : index
    %c0_33 = arith.constant 0 : index
    %c0_34 = arith.constant 0 : index
    %54 = vector.load %arg11[%c0_32, %c0_33, %c0_34] : memref<1x8x32xf32, #tpu.memory_space<vmem>>, vector<1x8x32xf32>
    %55 = vector.shape_cast %54 : vector<1x8x32xf32> to vector<8x32xf32>
    %56 = vector.shape_cast %53 : vector<8x32xf32> to vector<1x8x32xf32>
    tpu.vector_store %arg11[%c0_32, %c0_33, %c0_34], %56 {strides = array<i32>} : memref<1x8x32xf32, #tpu.memory_space<vmem>>, vector<1x8x32xf32>,
    return
  }
  func.func @transform_0(%arg0: i32, %arg1: i32) -> (i32, i32, i32) {
    %c0_i32 = arith.constant 0 : i32
    %c0_i32_0 = arith.constant 0 : i32
    %c0_i32_1 = arith.constant 0 : i32
    return %arg0, %c0_i32, %c0_i32_0 : i32, i32, i32
  }
  func.func @transform_1(%arg0: i32, %arg1: i32) -> (i32, i32, i32) {
    %c0_i32 = arith.constant 0 : i32
    %c0_i32_0 = arith.constant 0 : i32
    %c0_i32_1 = arith.constant 0 : i32
    return %arg1, %c0_i32, %c0_i32_0 : i32, i32, i32
  }
  func.func @transform_2(%arg0: i32, %arg1: i32) -> (i32, i32, i32) {
    %c0_i32 = arith.constant 0 : i32
    %c0_i32_0 = arith.constant 0 : i32
    %c0_i32_1 = arith.constant 0 : i32
    return %arg1, %c0_i32, %c0_i32_0 : i32, i32, i32
  }
  func.func @transform_3(%arg0: i32, %arg1: i32) -> (i32, i32, i32) {
    %c0_i32 = arith.constant 0 : i32
    %c0_i32_0 = arith.constant 0 : i32
    %c0_i32_1 = arith.constant 0 : i32
    return %arg1, %c0_i32, %c0_i32_0 : i32, i32, i32
  }
  func.func @transform_4(%arg0: i32, %arg1: i32) -> (i32, i32, i32) {
    %c0_i32 = arith.constant 0 : i32
    %c0_i32_0 = arith.constant 0 : i32
    %c0_i32_1 = arith.constant 0 : i32
    return %arg1, %c0_i32, %c0_i32_0 : i32, i32, i32
  }
  func.func @transform_5(%arg0: i32, %arg1: i32) -> (i32, i32) {
    %c0_i32 = arith.constant 0 : i32
    %c0_i32_0 = arith.constant 0 : i32
    %c0_i32_1 = arith.constant 0 : i32
    return %c0_i32, %c0_i32_0 : i32, i32
  }
  func.func @transform_6(%arg0: i32, %arg1: i32) -> (i32, i32) {
    %c0_i32 = arith.constant 0 : i32
    %c0_i32_0 = arith.constant 0 : i32
    %c0_i32_1 = arith.constant 0 : i32
    return %c0_i32, %c0_i32_0 : i32, i32
  }
  func.func @transform_7(%arg0: i32, %arg1: i32) -> (i32, i32, i32) {
    %c0_i32 = arith.constant 0 : i32
    %c0_i32_0 = arith.constant 0 : i32
    %c0_i32_1 = arith.constant 0 : i32
    return %arg1, %c0_i32, %c0_i32_0 : i32, i32, i32
  }
  func.func @transform_8(%arg0: i32, %arg1: i32) -> (i32, i32, i32) {
    %c0_i32 = arith.constant 0 : i32
    %c0_i32_0 = arith.constant 0 : i32
    %c0_i32_1 = arith.constant 0 : i32
    %c0_i32_2 = arith.constant 0 : i32
    return %c0_i32, %c0_i32_0, %c0_i32_1 : i32, i32, i32
  }
  func.func @transform_9(%arg0: i32, %arg1: i32) -> (i32, i32, i32) {
    %c0_i32 = arith.constant 0 : i32
    %c0_i32_0 = arith.constant 0 : i32
    %c0_i32_1 = arith.constant 0 : i32
    return %arg0, %c0_i32, %c0_i32_0 : i32, i32, i32
  }
}

</mosaic_0001>

<bundles_post_ra>
// kernel: tpu_custom_call.1
= control target key start
LH: loop header
LB: loop body
LE: loop exit
PB: predicated region body
PF: predicated region fallthrough
CT: control target
= control target key end

     0   :  { %s1229_s0 = inlined_call_operand.vmem [shape: f32[2,8,32], index: 0, kind: input, shape index: {}]   ;;  %s1230_s1 = inlined_call_operand.vmem [shape: f32[2,32,128], index: 1, kind: input, shape index: {}]   ;;  %s1231_s2 = inlined_call_operand.vmem [shape: f32[2,1,128], index: 2, kind: input, shape index: {}]   ;;  %s1232_s3 = inlined_call_operand.vmem [shape: f32[2,32,64], index: 3, kind: input, shape index: {}]   ;;  %s1233_s4 = inlined_call_operand.vmem [shape: f32[2,1,64], index: 4, kind: input, shape index: {}]   ;;  %s1234_s5 = inlined_call_operand.vmem [shape: f32[8,32], index: 5, kind: input, shape index: {}]   ;;  %s1235_s6 = inlined_call_operand.vmem [shape: f32[8,32], index: 6, kind: input, shape index: {}]   ;;  %s1236_s7 = inlined_call_operand.vmem [shape: f32[2,64,32], index: 7, kind: input, shape index: {}]   ;;  %s1237_s8 = inlined_call_operand.vmem [shape: f32[1,1,32], index: 8, kind: input, shape index: {}]   ;;  %s1238_s9 = inlined_call_operand.hbm [shape: f32[2,8,32], index: 9, kind: output, shape index: {}]  }
   0x1   :  { %1251 = sst [smem:[#allocation15_spill]] %s1229_s0 }
   0x2   :  { %1252 = sst [smem:[#allocation16_spill]] %s1238_s9 }
   0x3   :  { %14 = vsyncpa [#allocation3], 0 }
   0x4   :  { %16 = vsyncpa [#allocation3 + $0x1], 0  ;;  %s1040_s30 = smov 0   ;;  %s1042_s10 = smov 0  }
   0x5   :  { %s1044_s11 = smov 0   ;;  %s1046_s12 = smov 0  }
   0x6   :  { %s1048_s13 = smov 0   ;;  %s1050_s14 = smov 0  }
   0x7   :  { %s1052_s15 = smov 0   ;;  %s1054_s16 = smov 0  }
   0x8 LB: > { %1253 = sst [smem:[#allocation5_spill]] %s957_s30  ;;  %s783_s17 = sadd.s32 4294967295, %s985_s16   ;;  %s985_s16 = sphi %s1054_s16, %s22_s16   ;;  %s981_s15 = sphi %s1052_s15, %s1277_s15   ;;  %s977_s14 = sphi %s1050_s14, %s1276_s14   ;;  %s973_s13 = sphi %s1048_s13, %s1275_s13   ;;  %s969_s12 = sphi %s1046_s12, %s1274_s12   ;;  %s965_s11 = sphi %s1044_s11, %s1273_s11   ;;  %s961_s10 = sphi %s1042_s10, %s1279_s10   ;;  %s957_s30 = sphi %s1040_s30, %s1278_s30  }
   0x9   : > { %1254 = sst [smem:[#allocation6_spill]] %s965_s11  ;;  %s784_s18 = sadd.s32 4294967294, %s985_s16  }
   0xa   : > { %1255 = sst [smem:[#allocation7_spill]] %s977_s14  ;;  %s31_s19 = sadd.s32 1, %s977_s14 }
   0xb   : > { %1256 = sst [smem:[#allocation8_spill]] %s981_s15  ;;  %p32_p0 = scmp.ge.s32.totalorder %s31_s19, 2 }
   0xc   : > { %1257 = sst [smem:[#allocation9_spill]] %s985_s16  ;;  %s34_s20 = sadd.s32 1, %s981_s15 }
   0xd   : > { %p270_p1 = scmp.ne.s32.totalorder %s965_s11, %s961_s10  ;;  %p271_p2 = scmp.eq.s32.totalorder %s783_s17, 3 }
   0xe   : > { %s1281_s19 = smov (%p32_p0, %s31_s19), 0  ;;  %s1283_s20 = smov (!%p32_p0, %s34_s20), %s981_s15 }
   0xf   : > { %1258 = sst [smem:[#allocation10_spill]] %s1281_s19  ;;  %p1089_p3 = por %p271_p2, %p270_p1 }
  0x10   : > { %p276_p4 = scmp.ne.s32.totalorder %s961_s10, %s957_s30  ;;  %p36_p5 = scmp.ge.s32.totalorder %s1283_s20, 2 }
  0x11   : > { %s1259_s21 = scalar_select %p1089_p3, 1, 0 }
  0x12   : > { %p277_p6 = scmp.eq.s32.totalorder %s784_s18, 3  ;;  %p787_p7 = scmp.ge.s32.totalorder %s985_s16, 1 }
  0x13   : > { %1260 = sst [smem:[#allocation11_spill]] %s1259_s21  ;;  %p347_p8 = scmp.lt.s32.totalorder %s985_s16, 5 }
  0x14   : > { %s1285_s20 = smov (%p36_p5, %s1283_s20), 0  ;;  %p1099_p9 = por %p277_p6, %p276_p4 }
  0x15   : > { %1261 = sst [smem:[#allocation12_spill]] %s1285_s20  ;;  %p348_p10 = pnand %p787_p7, %p347_p8 }
  0x16   : > { %s1262_s22 = scalar_select %p1099_p9, 1, 0 }
  0x17   : > { %s257_s23 = ssub.s32 %s981_s15, %s1285_s20  ;;  %s260_s24 = sadd.s32 1, %s965_s11 }
  0x18   : > { %1263 = sst [smem:[#allocation13_spill]] %s1262_s22  ;;  %p258_p11 = scmp.eq.s32.totalorder %s257_s23, 0 }
  0x19   : > { %351 = sbr.rel (%p348_p10) target bundleno = 1065 (0x429), region = 56  ;;  %s1242_s26 = sand.u32 (!%p348_p10), 1, %s961_s10  }
  0x1a   : > { %s1107_s25 = scalar_select %p258_p11, %s965_s11, %s260_s24  }
  0x1b   : > { %p403_p12 = scmp.lt.s32.totalorder (!%p348_p10), %s973_s13, 1  ;;  %s788_s27 = sshll.u32 (!%p348_p10), %s1242_s26, 3 }
  0x1c   : > { %1264 = sst [smem:[#allocation14_spill]] %s1107_s25  ;;  %p407_p13 = scmp.lt.s32.totalorder (!%p348_p10), %s969_s12, 1 }
  0x1d   : > { %s1265_s0 = sld [smem:[#allocation15_spill]] (!%p348_p10)  ;;  %s1144_s15 = scalar_lea.vmem (!%p348_p10), [#allocation2], %s788_s27 }
  0x1e   : > { %s404_s28 = scalar_select %p403_p12, %s973_s13, 1 }
  0x1f   : > { %s1116_s29 = scalar_select %p407_p13, %s969_s12, 1 }
  0x20   : > { %s789_s17 = sshll.u32 %s404_s28, 3  ;;  %p796_p0 = scmp.ne.s32.totalorder %s969_s12, 0 }
  0x21   : > { %s807_s20 = sshll.u32 %s1116_s29, 5  ;;  %s414_s11 = scalar_lea.vmem %s1231_s2, %s1116_s29 }
  0x22   : > { %s411_s14 = scalar_lea.vmem %s1230_s1, %s807_s20  ;;  %s1132_s16 = scalar_lea.vmem %s1232_s3, %s807_s20 }
  0x23   : > { %s406_s24 = scalar_lea.vmem %s1265_s0, %s789_s17  ;;  %s422_s21 = scalar_lea.vmem %s1233_s4, %s1116_s29 }
  0x24   : > { %s809_s18 = sshll.u32 %s1116_s29, 6  ;;  %431 = sbr.rel (%p796_p0) target bundleno = 43 (0x2b), region = 60 }
  0x25   : > { %s1142_s0 = scalar_lea.vmem %s1236_s7, %s809_s18 }
  0x29   : > { %v884_v0 = vld [vmem:[%s1237_s8] ss:$0 sm:$0xff]  ;;  %vm436_vm0 = vcmask 261120  }
  0x2a   : > { %437 = vst.msk [vmem:[%s1144_s15] sm:$0xff] %vm436_vm0, %v884_v0 }
  0x2b PF: > { %v444_v1 = vld [vmem:[%s411_s14 + $0x18] sm:$0xff]  ;;  %v443_v2 = vld [vmem:[%s411_s14 + $0x10] sm:$0xff]  ;;  %v440_v3 = vld [vmem:[%s1235_s6] sm:$0xff]  ;;  %s987_s20 = smov 96   ;;  %vm449_vm1 = vcmask 261120   ;;  %s988_s26 = smov 64   ;;  %v554_v23 = vlaneseq }
  0x2c   : > { %465 = vmatpush.msra.mxu0 %v444_v1  ;;  %v442_v4 = vld [vmem:[%s411_s14 + $0x8] sm:$0xff]  ;;  %517 = vrot.lane.b32.xlu0 %v440_v3, %s987_s20  ;;  %v441_v5 = vld [vmem:[%s411_s14] sm:$0xff]  ;;  %s989_s27 = smov 32   ;;  %vm560_vm3 = vcmask 64512   ;;  %v476_v29 = vld [vmem:[%s1132_s16 + $0x18] sm:$0xff]  ;;  %vm617_vm8 = vcmask 523264  }
  0x2d   : > { %v438_v6 = vld [vmem:[%s406_s24] sm:$0xff]  ;;  %v555_v24 = vshrl.u32 %v554_v23, 7  ;;  %v557_v25 = vand.u32 127, %v554_v23  ;;  %v475_v30 = vld [vmem:[%s1132_s16 + $0x10] sm:$0xff]  ;;  %493 = vmatpush.msra.mxu1 %v476_v29  ;;  %v474_v31 = vld [vmem:[%s1132_s16 + $0x8] sm:$0xff]  ;;  %s1267_s28 = sld [smem:[#allocation16_spill]] }
  0x2e   : > { %466 = vmatpush.msra.mxu0 %v443_v2  ;;  %v439_v7 = vld [vmem:[%s1234_s5] sm:$0xff]  ;;  %v616_v41 = vld [vmem:[%s1142_s0 + $0x38] sm:$0xff]  ;;  %v615_v42 = vld [vmem:[%s1142_s0 + $0x30] sm:$0xff]  ;;  %s656_s17 = sshll.u32 %s1144_s15, 4  ;;  %s657_s17 = int_to_ptr.vmem [resolvable:$true] %s656_s17 }
  0x2f   : > { %v885_v8 = vld [vmem:[%s414_s11] ss:$0 sm:$0xff]  ;;  %vm558_vm2 = vcmp.ge.s32.totalorder %v555_v24, %v557_v25  ;;  %494 = vmatpush.msra.mxu1 %v475_v30  ;;  %629 = vmatpush.msra.mxu3 %v616_v41  ;;  %v614_v43 = vld [vmem:[%s1142_s0 + $0x28] sm:$0xff]  ;;  %v612_v45 = vld [vmem:[%s1142_s0 + $0x18] sm:$0xff] }
  0x30   : > { %467 = vmatpush.msra.mxu0 %v442_v4  ;;  %v473_v32 = vld [vmem:[%s1132_s16] sm:$0xff]  ;;  %v611_v46 = vld [vmem:[%s1142_s0 + $0x10] sm:$0xff]  ;;  %v610_v47 = vld [vmem:[%s1142_s0 + $0x8] sm:$0xff] }
  0x31   : > { %495 = vmatpush.msra.mxu1 %v474_v31  ;;  %v886_v38 = vld [vmem:[%s422_s21] ss:$0 sm:$0xff]  ;;  %630 = vmatpush.msra.mxu3 %v615_v42  ;;  %s804_s21 = sshll.u32 %s973_s13, 3 }
  0x32   : > { %468 = vmatpush.msra.mxu0 %v441_v5  ;;  %v613_v44 = vld [vmem:[%s1142_s0 + $0x20] sm:$0xff] }
  0x33   : > { %797 = vmatmul.msk.f32.vlgmr.msra.gmra.mxu0 %vm449_vm1, %v438_v6  ;;  %496 = vmatpush.msra.mxu1 %v473_v32  ;;  %v609_v60 = vld [vmem:[%s1142_s0] sm:$0xff]  ;;  %s654_s18 = scalar_lea.hbm %s1267_s28, %s804_s21  ;;  %s1268_s0 = sand.u32 1, %s961_s10  }
  0x34   : > { %513 = vrot.lane.b32.xlu0 %v439_v7, %s988_s26  ;;  %798 = vmatmul.msk.f32.vlgmr.msra.gmra.mxu1 %vm449_vm1, %v438_v6  ;;  %v608_v62 = vld [vmem:[%s1144_s15] sm:$0xff]  ;;  %s658_s23 = sshll.u32 %s654_s18, 4  ;;  %s644_s19 = scalar_lea.sflag [#allocation3], %s1268_s0  ;;  %s659_s23 = int_to_ptr.hbm [resolvable:$true] %s658_s23 }
  0x35   : > { %631 = vmatpush.msra.mxu3 %v614_v43  ;;  %s905_s25 = sshra.s32 %s659_s23, 4  ;;  %s906_s25 = int_to_ptr.hbm [resolvable:$true] %s905_s25 }
  0x36   : > { %s907_s9 = scalar_lea.hbm %s906_s25, 8  ;;  %p912_p5 = scmp.lt.s32.totalorder %s906_s25, %s1267_s28 }
  0x37   : > { %632 = vmatpush.msra.mxu3 %v613_v44  ;;  %p908_p1 = scmp.ne.s32.totalorder %s906_s25, %s907_s9 }
  0x39   : > { %633 = vmatpush.msra.mxu3 %v612_v45  ;;  %p909_p2 = pnand %p908_p1, %p1089_p3 }
  0x3b   : > { %634 = vmatpush.msra.mxu3 %v611_v46  ;;  %p910_p4 = pneg %p909_p2 }
  0x3d   : > { %635 = vmatpush.msra.mxu3 %v610_v47 }
  0x3f   : > { %636 = vmatpush.msra.mxu3 %v609_v60 }
  0x9e   : > { %v518_v11 = vpop.permute.xlu0 %517 }
  0xa6   : > { %v514_v13 = vpop.permute.xlu0 %513 }
  0xb0   : > { %v470_v9 = vpop.f32.mrf.mxu0 }
  0xb1   : > { %v471_v10 = vadd.f32 %v885_v8, %v470_v9  ;;  %v498_v39 = vpop.f32.mrf.mxu1 }
  0xb2   : > { %v499_v40 = vadd.f32 %v886_v38, %v498_v39 }
  0xb3   : > { %v520_v12 = vmul.f32 %v518_v11, %v471_v10  ;;  %v516_v14 = vmul.f32 %v514_v13, %v471_v10  ;;  %v501_v20 = vmul.f32 %v471_v10, %v439_v7 }
  0xb5   : > { %522 = vrot.lane.b32.xlu1 %v520_v12, %s987_s20 }
  0xbd   : > { %503 = vrot.lane.b32.xlu1 %v440_v3, %s989_s27 }
 0x127   : > { %v523_v15 = vpop.permute.xlu1 %522 }
 0x128   : > { %v525_v16 = vadd.f32 %v523_v15, %v516_v14 }
 0x12a   : > { %527 = vrot.lane.b32.xlu2 %v525_v16, %s988_s26 }
 0x12f   : > { %v504_v17 = vpop.permute.xlu1 %503 }
 0x130   : > { %v506_v18 = vmul.f32 %v504_v17, %v471_v10 }
 0x132   : > { %508 = vrot.lane.b32.xlu2 %v506_v18, %s987_s20  ;;  %s911_s20 = scalar_lea.hbm %s1267_s28, 16 }
 0x133   : > { %p913_p6 = scmp.lt.s32.totalorder %s911_s20, %s907_s9 }
 0x135   : > { %p914_p7 = por %p913_p6, %p912_p5 }
 0x137   : > { %p915_p8 = pnand %p914_p7, %p910_p4 }
 0x184   : > { %v528_v19 = vpop.permute.xlu2 %527 }
 0x185   : > { %799 = vmatpush.xpose.msk.msra.mxu2 %vm449_vm1, %v528_v19 }
 0x189   : > { %603 = vmatpush.msrb.mxu2 %v499_v40 }
 0x18c   : > { %v509_v21 = vpop.permute.xlu2 %508 }
 0x18d   : > { %v511_v22 = vadd.f32 %v509_v21, %v501_v20 }
 0x18f   : > { %800 = vmatmul.msk.f32.vlgmr.msra.gmra.mxu2 %vm449_vm1, %v511_v22 }
 0x212   : > { %v551_v26 = vpop.f32.mrf.mxu2 }
 0x213   : > { %v559_v27 = vsel %vm558_vm2, %v551_v26, -inf }
 0x214   : > { %v561_v28 = vsel %vm560_vm3, %v559_v27, -inf }
 0x215   : > { %562 = vmax.xlane.f32.xlu0 %v561_v28 }
 0x288   : > { %v563_v33 = vpop.xlane.xlu0 %562 }
 0x289   : > { %v564_v34 = vsub.f32 %v559_v27, %v563_v33 }
 0x28b   : > { %v565_v35 = vmul.f32 1.442695, %v564_v34 }
 0x28d   : > { %887 = vpow2.f32 %v565_v35 }
 0x293   : > { %v888_v36 = vpop.eup %887 }
 0x294   : > { %v567_v37 = vsel %vm560_vm3, %v888_v36, 0.0 }
 0x295   : > { %568 = vadd.xlane.f32.xlu1 %v567_v37 }
 0x308   : > { %v569_v48 = vpop.xlane.xlu1 %568 }
 0x309   : > { %889 = vrcp.f32 %v569_v48  ;;  %v581_v52 = vand.u32 2147483648, %v569_v48  ;;  %v579_v54 = vand.u32 2147483647, %v569_v48  ;;  %vm575_vm5 = vweird.f32 %v569_v48 }
 0x30b   : > { %v582_v56 = vor.u32 1.1754944e-38, %v581_v52  ;;  %vm580_vm7 = vcmp.eq.f32.partialorder %v579_v54, 8.507059e+37 }
 0x30f   : > { %v890_v49 = vpop.eup %889 }
 0x310   : > { %v571_v50 = vmul.f32 %v890_v49, %v569_v48  ;;  %vm576_vm4 = vweird.f32 %v890_v49 }
 0x311   : > { %vm577_vm6 = vmor %vm575_vm5, %vm576_vm4 }
 0x312   : > { %v572_v51 = vsub.f32 1.0, %v571_v50 }
 0x314   : > { %v573_v53 = vmul.f32 %v890_v49, %v572_v51 }
 0x316   : > { %v574_v55 = vadd.f32 %v890_v49, %v573_v53 }
 0x318   : > { %v578_v57 = vsel %vm577_vm6, %v890_v49, %v574_v55 }
 0x319   : > { %v583_v58 = vsel %vm580_vm7, %v582_v56, %v578_v57 }
 0x31a   : > { %v584_v59 = vmul.f32 %v888_v36, %v583_v58 }
 0x31c   : > { %801 = vmatmul.msk.f32.vlgmr.msrb.gmra.mxu2 %vm560_vm3, %v584_v59 }
 0x39f   : > { %v605_v61 = vpop.f32.mrf.mxu2 }
 0x3a0   : > { %802 = vmatmul.msk.f32.vlgmr.msra.gmra.mxu3 %vm617_vm8, %v605_v61 }
 0x423   : > { %v638_v63 = vpop.f32.mrf.mxu3 }
 0x424   : > { %v641_v0 = vadd.f32 %v638_v63, %v608_v62 }
 0x426   : > { %642 = vst.msk [vmem:[%s1144_s15] sm:$0xff] %vm449_vm1, %v641_v0 }
 0x427   : > { %918 = shalt.err (!%p915_p8)
}
 0x428   : > { %810 = dma.vmem_to_hbm [thread:$0]  (%p1089_p3), %s657_s17, 128, %s659_s23, %s644_s19  }
 0x429 PF: > { %s1269_s15 = sld [smem:[#allocation9_spill]] }
 0x42a   : > { %s1270_s26 = sld [smem:[#allocation5_spill]] }
 0x42f   : > { %p816_p10 = scmp.ge.s32.totalorder %s1269_s15, 2 }
 0x430   : > { %s670_s11 = sand.u32 1, %s1270_s26  }
 0x431   : > { %p813_p11 = pnand %p816_p10, %p1099_p9  ;;  %s671_s14 = scalar_lea.sflag [#allocation3], %s670_s11 }
 0x433   : > { %p814_p12 = pneg %p813_p11 }
 0x435   : > { %952 = dma.done.wait (%p814_p12), %s671_s14, 128  }
 0x436   : > { %954 = vsyncadd (%p814_p12), %s671_s14, 4294967168  ;;  %s22_s16 = sadd.s32 1, %s1269_s15   ;;  %s1272_s21 = sld [smem:[#allocation6_spill]] }
 0x437   : > { %p19_p13 = scmp.ge.s32.totalorder %s22_s16, 6   ;;  %s1273_s11 = sld [smem:[#allocation14_spill]] }
 0x438   : > { %s1274_s12 = sld [smem:[#allocation7_spill]]  ;;  %s1278_s30 = smov %s961_s10 }
 0x439   : > { %s1275_s13 = sld [smem:[#allocation8_spill]]  ;;  %21 = sbr.rel (!%p19_p13) target bundleno = 8 (0x8), region = 110 }
 0x43a   : > { %s1276_s14 = sld [smem:[#allocation10_spill]] }
 0x43b   : > { %s1277_s15 = sld [smem:[#allocation12_spill]] }
 0x43c   : > { %s1279_s10 = smov %s1272_s21 }
 0x43e   :  { %677 = vsyncpa [#allocation3], 1 }
 0x43f   :  { %679 = vsyncpa [#allocation3 + $0x1], 1 }

</bundles_post_ra>
